<compile_context>
chip_gen: v7x
topology: tpu7x:2x2x1
jax: 0.10.0
libtpu: 0.0.40
codegen_flags: <defaults>
</compile_context>

<pallas_src>
import functools

import jax
import jax.numpy as jnp
from jax import lax
from jax.experimental import pallas as pl
from jax.experimental.pallas import tpu as pltpu


# ---------------------------------------------------------------------------
# Kernel 1: spectral-norm power iteration (power_iterations = 1), grid-less.
#   v = l2_normalize(W^T u) ; u = l2_normalize(W v) ; sigma = u . (W v)
# The stored v is overwritten by a single iteration, so it is not an input.
# Emits 1/sigma so the conv kernel skips the per-step divide.
# ---------------------------------------------------------------------------
def _spectral_kernel(w_ref, u_ref, u_out, v_out, inv_sigma_out):
    w = w_ref[...]                                    # (O, K) f32
    u = u_ref[...]                                    # (1, O) f32

    # v = l2_normalize(W^T u)
    wtu = lax.dot_general(u, w, (((1,), (0,)), ((), ())),
                          preferred_element_type=jnp.float32)   # (1, K)
    v_new = wtu / (jnp.sqrt(jnp.sum(wtu * wtu)) + 1e-12)

    # u = l2_normalize(W v)
    wv = lax.dot_general(v_new, w, (((1,), (1,)), ((), ())),
                         preferred_element_type=jnp.float32)    # (1, O)
    u_new = wv / (jnp.sqrt(jnp.sum(wv * wv)) + 1e-12)

    sigma = jnp.sum(u_new * wv)                       # u . (W v)

    u_out[...] = u_new
    v_out[...] = v_new
    inv_sigma_out[...] = (1.0 / sigma).reshape(1, 1)


def spectral_norm_update(w_mat, u):
    height, width = w_mat.shape
    u2 = u.reshape(1, height).astype(jnp.float32)
    vmem = pl.BlockSpec(memory_space=pltpu.MemorySpace.VMEM)
    u_new, v_new, inv_sigma = pl.pallas_call(
        _spectral_kernel,
        out_shape=(jax.ShapeDtypeStruct((1, height), jnp.float32),
                   jax.ShapeDtypeStruct((1, width), jnp.float32),
                   jax.ShapeDtypeStruct((1, 1), jnp.float32)),
        in_specs=[vmem, vmem],
        out_specs=(vmem, vmem, vmem),
    )(w_mat.astype(jnp.float32), u2)
    return u_new.reshape(height), v_new.reshape(width), inv_sigma


# ---------------------------------------------------------------------------
# Kernel 2: fused conv.  Per batch image:
#   acc(O, Sv) = sum_t  W_tap[t] (O,C)  @  xflat[:, off_t : off_t + Sv] (C,Sv)
#   out        = (acc * (1/sigma) + bias).astype(out_dtype)
# where xflat = padded image flattened to (C, Hp*Wp) and off_t = ki*Wp + kj.
# Valid output pixel (h, w) lives at flat position h*Wp + w; garbage columns
# (w >= Wo) are computed and discarded by the wrapper slice.
# ---------------------------------------------------------------------------
def _conv_tap_kernel(inv_sigma_ref, w_ref, b_ref, x_ref, o_ref, acc_ref, *,
                     offsets, sv):
    for t, off in enumerate(offsets):                 # static unrolled tap loop
        win = x_ref[:, off:off + sv]                  # (C, Sv) bf16 lane window
        part = lax.dot_general(w_ref[t], win, (((1,), (0,)), ((), ())),
                               preferred_element_type=jnp.float32)   # (O, Sv)
        if t == 0:
            acc_ref[...] = part                       # first tap initializes
        else:
            acc_ref[...] += part
    o_ref[...] = (acc_ref[...] * inv_sigma_ref[0, 0]
                  + b_ref[...]).astype(o_ref.dtype)


def spectral_norm_conv2d(x, w, b, u, v, *, stride=1, padding=1,
                         out_dtype=jnp.bfloat16):
    """Forward of SpectralNorm(Conv2d): power-iterate u/v, scale W by 1/sigma,
    convolve.  Returns (out, u_new, v_new).  Use out_dtype=jnp.float32 for
    closer-to-f32 parity (bf16 default halves output HBM writeback)."""
    del v  # one power iteration overwrites v from u; previous value is unused
    B, C, H, W = x.shape
    O, Cw, kH, kW = w.shape
    assert Cw == C
    K = C * kH * kW

    # ---- Step 1: power iteration on the (O, K) matrix (pure f32). ----------
    u_new, v_new, inv_sigma = spectral_norm_update(w.reshape(O, K), u)

    # Tap-major bf16 weight (kH*kW, O, C): each tap is a contiguous (O, C)
    # MXU operand.  (Weight is tiny vs activations, so the wrapper-side
    # transpose+cast is cheaper than an in-kernel relayout in kernel 1.)
    w_taps = jnp.transpose(w, (2, 3, 0, 1)).reshape(kH * kW, O, C)
    w_taps = w_taps.astype(jnp.bfloat16)

    # Padded activations, spatial flattened onto the lane axis, bf16.
    Hp, Wp = H + 2 * padding, W + 2 * padding
    Ho1, Wo1 = Hp - kH + 1, Wp - kW + 1            # stride-1 output dims
    Sp = Hp * Wp
    Sv = (Ho1 - 1) * Wp + Wo1                      # flat span of valid outputs
    xp = jnp.pad(x, ((0, 0), (0, 0), (padding, padding), (padding, padding)))
    xflat = xp.reshape(B, C, Sp).astype(jnp.bfloat16)

    T = kH * kW
    offs = tuple(ki * Wp + kj for ki in range(kH) for kj in range(kW))

    # VMEM budget (double-buffered blocks + f32 accumulator scratch).
    out_bytes = jnp.dtype(out_dtype).itemsize
    est = (2 * C * Sp * 2 + 2 * T * O * C * 2 + 2 * O * 4
           + 2 * O * Sv * out_bytes + O * Sv * 4)
    # TODO(synk): row-tile the spatial axis (overlapping-window manual DMA) if
    # `est` ever approaches v7x's 64 MiB VMEM; DCGAN-scale layers stay << that.
    vmem_limit = int(min(60 * 2 ** 20, max(32 * 2 ** 20, 2 * est)))

    kernel = functools.partial(_conv_tap_kernel, offsets=offs, sv=Sv)

    out_flat = pl.pallas_call(
        kernel,
        out_shape=jax.ShapeDtypeStruct((B, O, Sv), out_dtype),
        grid=(B,),  # batch axis is "parallel" -> feeds both TCs on v7x if B>=2
        in_specs=[
            pl.BlockSpec(memory_space=pltpu.MemorySpace.SMEM),            # 1/sigma (1,1) f32
            pl.BlockSpec((T, O, C), lambda bb: (0, 0, 0)),                # tap-major W, resident
            pl.BlockSpec((O, 1), lambda bb: (0, 0)),                      # bias f32, resident
            pl.BlockSpec((pl.Squeezed(), C, Sp), lambda bb: (bb, 0, 0)),  # activations bf16
        ],
        out_specs=pl.BlockSpec((pl.Squeezed(), O, Sv), lambda bb: (bb, 0, 0)),
        scratch_shapes=[pltpu.VMEM((O, Sv), jnp.float32)],
        compiler_params=pltpu.CompilerParams(
            dimension_semantics=("parallel",),
            vmem_limit_bytes=vmem_limit),
    )(inv_sigma, w_taps, b.reshape(O, 1).astype(jnp.float32), xflat)

    # Un-flatten: flat position p = h*Wp + w ; columns w >= Wo1 are discarded.
    out_full = jnp.pad(out_flat, ((0, 0), (0, 0), (0, Ho1 * Wp - Sv)))
    out_full = out_full.reshape(B, O, Ho1, Wp)[:, :, :, :Wo1]
    if stride != 1:
        # TODO(synk): dedicated strided kernel; this computes the stride-1
        # output and subsamples (stride^2 extra MXU work, correct results).
        out_full = out_full[:, :, ::stride, ::stride]
    # TODO(synk): for tiny spatial layers (Ho*Wo < 128) fold the batch dim into
    # the lane axis to keep the output stores lane-dense.
    return out_full, u_new, v_new


# ---------------------------------------------------------------------------
# Pure-JAX reference (mirrors SpectralNorm.update_u_v + Conv2d.forward), f32.
# ---------------------------------------------------------------------------
def _reference(x, w, b, u, v):
    O = w.shape[0]
    w_mat = w.reshape(O, -1)
    v1 = w_mat.T @ u
    v1 = v1 / (jnp.linalg.norm(v1) + 1e-12)
    u1 = w_mat @ v1
    u1 = u1 / (jnp.linalg.norm(u1) + 1e-12)
    sigma = u1 @ (w_mat @ v1)
    w_sn = w / sigma
    out = lax.conv_general_dilated(x, w_sn, (1, 1), [(1, 1), (1, 1)],
                                   dimension_numbers=('NCHW', 'OIHW', 'NCHW'))
    return out + b.reshape(1, O, 1, 1), u1, v1


if __name__ == "__main__":
    key = jax.random.PRNGKey(0)
    kx, kw, kb, ku, kv = jax.random.split(key, 5)

    B, C, H, W = 2, 4, 16, 16
    O, kH, kW = 8, 3, 3

    x = jax.random.normal(kx, (B, C, H, W), jnp.float32)
    w = 0.1 * jax.random.normal(kw, (O, C, kH, kW), jnp.float32)
    b = 0.1 * jax.random.normal(kb, (O,), jnp.float32)

    # u, v buffers: normal init then l2_normalize (as in params_2nd_Method)
    u = jax.random.normal(ku, (O,), jnp.float32)
    v = jax.random.normal(kv, (C * kH * kW,), jnp.float32)
    u = u / (jnp.linalg.norm(u) + 1e-12)
    v = v / (jnp.linalg.norm(v) + 1e-12)

    out, u_new, v_new = spectral_norm_conv2d(x, w, b, u, v, stride=1, padding=1)
    out = jax.block_until_ready(out)

    ref_out, ref_u, ref_v = _reference(x, w, b, u, v)
    assert out.shape == (B, O, H, W)
    # Power iteration is pure f32 -> tight match.
    assert jnp.allclose(u_new, ref_u, rtol=1e-5, atol=1e-5), "u mismatch"
    assert jnp.allclose(v_new, ref_v, rtol=1e-5, atol=1e-5), "v mismatch"
    # Conv uses bf16 operands / bf16 output (f32 accumulation) -> looser tol.
    assert jnp.allclose(out.astype(jnp.float32), ref_out,
                        rtol=2e-2, atol=2e-2), "mismatch vs reference"

    print("KERNEL_OK")
</pallas_src>

<mosaic_0001>
module attributes {stable_mosaic.version = 11 : i64} {
  func.func @_spectral_kernel(%arg0: memref<8x36xf32, #tpu.memory_space<vmem>>, %arg1: memref<1x8xf32, #tpu.memory_space<vmem>>, %arg2: memref<1x8xf32, #tpu.memory_space<vmem>>, %arg3: memref<1x36xf32, #tpu.memory_space<vmem>>, %arg4: memref<1x1xf32, #tpu.memory_space<vmem>>) attributes {dimension_semantics = [], scalar_prefetch = 0 : i64, scratch_operands = 0 : i64, tpu.core_type = #tpu.core_type<tc>} {
    %c0 = arith.constant 0 : index
    %c0_0 = arith.constant 0 : index
    %0 = vector.load %arg0[%c0, %c0_0] : memref<8x36xf32, #tpu.memory_space<vmem>>, vector<8x36xf32>
    %c0_1 = arith.constant 0 : index
    %c0_2 = arith.constant 0 : index
    %1 = vector.load %arg1[%c0_1, %c0_2] : memref<1x8xf32, #tpu.memory_space<vmem>>, vector<1x8xf32>
    %cst = arith.constant dense<0.000000e+00> : vector<1x36xf32>
    %2 = tpu.matmul %1, %0, %cst {dimension_numbers = #tpu.dot_dimension_numbers<[1], [0], [0], [1], [0, 0, 1, 1], [], []>} : vector<1x8xf32>, vector<8x36xf32>, vector<1x36xf32> -> vector<1x36xf32>
    %3 = arith.mulf %2, %2 : vector<1x36xf32>
    %4 = vector.shape_cast %3 : vector<1x36xf32> to vector<1x1x36xf32>
    %cst_3 = arith.constant dense<0.000000e+00> : vector<1xf32>
    %5 = vector.multi_reduction <add>, %4, %cst_3 [1, 2] : vector<1x1x36xf32> to vector<1xf32>
    %6 = vector.shape_cast %5 : vector<1xf32> to vector<1x1x1xf32>
    %7 = vector.extract %6[0, 0, 0] : f32 from vector<1x1x1xf32>
    %8 = math.sqrt %7 : f32
    %cst_4 = arith.constant 9.99999996E-13 : f32
    %9 = arith.addf %8, %cst_4 : f32
    %10 = vector.broadcast %9 : f32 to vector<1x36xf32>
    %11 = arith.divf %2, %10 : vector<1x36xf32>
    %cst_5 = arith.constant dense<0.000000e+00> : vector<1x8xf32>
    %12 = tpu.matmul %11, %0, %cst_5 {dimension_numbers = #tpu.dot_dimension_numbers<[1], [1], [0], [0], [0, 0, 1, 0], [], []>} : vector<1x36xf32>, vector<8x36xf32>, vector<1x8xf32> -> vector<1x8xf32>
    %13 = arith.mulf %12, %12 : vector<1x8xf32>
    %14 = vector.shape_cast %13 : vector<1x8xf32> to vector<1x1x8xf32>
    %cst_6 = arith.constant dense<0.000000e+00> : vector<1xf32>
    %15 = vector.multi_reduction <add>, %14, %cst_6 [1, 2] : vector<1x1x8xf32> to vector<1xf32>
    %16 = vector.shape_cast %15 : vector<1xf32> to vector<1x1x1xf32>
    %17 = vector.extract %16[0, 0, 0] : f32 from vector<1x1x1xf32>
    %18 = math.sqrt %17 : f32
    %cst_7 = arith.constant 9.99999996E-13 : f32
    %19 = arith.addf %18, %cst_7 : f32
    %20 = vector.broadcast %19 : f32 to vector<1x8xf32>
    %21 = arith.divf %12, %20 : vector<1x8xf32>
    %22 = arith.mulf %21, %12 : vector<1x8xf32>
    %23 = vector.shape_cast %22 : vector<1x8xf32> to vector<1x1x8xf32>
    %cst_8 = arith.constant dense<0.000000e+00> : vector<1xf32>
    %24 = vector.multi_reduction <add>, %23, %cst_8 [1, 2] : vector<1x1x8xf32> to vector<1xf32>
    %25 = vector.shape_cast %24 : vector<1xf32> to vector<1x1x1xf32>
    %26 = vector.extract %25[0, 0, 0] : f32 from vector<1x1x1xf32>
    %c0_9 = arith.constant 0 : index
    %c0_10 = arith.constant 0 : index
    %27 = vector.load %arg2[%c0_9, %c0_10] : memref<1x8xf32, #tpu.memory_space<vmem>>, vector<1x8xf32>
    tpu.vector_store %arg2[%c0_9, %c0_10], %21 {strides = array<i32>} : memref<1x8xf32, #tpu.memory_space<vmem>>, vector<1x8xf32>,
    %c0_11 = arith.constant 0 : index
    %c0_12 = arith.constant 0 : index
    %28 = vector.load %arg3[%c0_11, %c0_12] : memref<1x36xf32, #tpu.memory_space<vmem>>, vector<1x36xf32>
    tpu.vector_store %arg3[%c0_11, %c0_12], %11 {strides = array<i32>} : memref<1x36xf32, #tpu.memory_space<vmem>>, vector<1x36xf32>,
    %cst_13 = arith.constant 1.000000e+00 : f32
    %29 = arith.divf %cst_13, %26 : f32
    %30 = vector.broadcast %29 : f32 to vector<1x1xf32>
    %c0_14 = arith.constant 0 : index
    %c0_15 = arith.constant 0 : index
    %31 = vector.load %arg4[%c0_14, %c0_15] : memref<1x1xf32, #tpu.memory_space<vmem>>, vector<1x1xf32>
    tpu.vector_store %arg4[%c0_14, %c0_15], %30 {strides = array<i32>} : memref<1x1xf32, #tpu.memory_space<vmem>>, vector<1x1xf32>,
    return
  }
}

</mosaic_0001>

<bundles_post_ra>
// kernel: tpu_custom_call.1
= control target key start
LH: loop header
LB: loop body
LE: loop exit
PB: predicated region body
PF: predicated region fallthrough
CT: control target
= control target key end

     0   :  { %10 = vsyncpa [#allocation3], 0  ;;  %s520_s0 = inlined_call_operand.hbm [shape: f32[8,36], index: 0, kind: input, shape index: {}]   ;;  %s521_s1 = inlined_call_operand.vmem [shape: f32[1,8], index: 1, kind: input, shape index: {}]   ;;  %s522_s2 = inlined_call_operand.hbm [shape: f32[1,8], index: 2, kind: output, shape index: {0}]   ;;  %s523_s3 = inlined_call_operand.hbm [shape: f32[1,36], index: 3, kind: output, shape index: {1}]   ;;  %s524_s4 = inlined_call_operand.hbm [shape: f32[1,1], index: 4, kind: output, shape index: {2}]  }
   0x1   :  { %11 = vsyncpa [#allocation4], 0 }
   0x2   :  { %12 = vsyncpa [#allocation7], 0  ;;  %s431_s15 = smov [#allocation2]   ;;  %s337_s19 = scalar_lea.hbm %s520_s0, 128 }
   0x3   :  { %s19_s16 = sshll.u32 %s431_s15, 4  ;;  %p338_p0 = scmp.ne.s32.totalorder %s520_s0, %s337_s19  ;;  %s20_s16 = int_to_ptr.vmem [resolvable:$true] %s19_s16 }
   0x4   :  { %p341_p1 = scmp.lt.u32.totalorder %s337_s19, %s520_s0 }
   0x6   :  { %p343_p2 = pnand %p341_p1, %p338_p0 }
   0x8   :  { %346 = shalt.err (!%p343_p2)
}
   0x9   :  { %s347_s24 = scalar_lea.vmem %s20_s16, 128  ;;  %p352_p4 = scmp.lt.s32.totalorder %s20_s16, %s20_s16 }
   0xa   :  { %p348_p3 = scmp.ne.s32.totalorder %s20_s16, %s347_s24  ;;  %p353_p5 = scmp.lt.s32.totalorder %s347_s24, %s347_s24 }
   0xc   :  { %p354_p6 = por %p353_p5, %p352_p4 }
   0xe   :  { %p355_p7 = pnand %p354_p6, %p348_p3 }
  0x10   :  { %358 = shalt.err (!%p355_p7)
}
  0x11   :  { %22 = dma.hbm_to_vmem [thread:$0]  %s520_s0, 128, %s20_s16, [#allocation3]  }
  0x12   :  { %425 = dma.done.wait [#allocation3], 128  }
  0x13   :  { %426 = vsyncadd [#allocation3], 4294967168  ;;  %v432_v0 = vmov 0.0   ;;  %vm433_vm0 = vmmov 0   ;;  %vm30_vm1 = vcmask 64512   ;;  %v28_v1 = vld [vmem:[#allocation2] sm:$0xff] }
  0x14   :  { %299 = vmatprep.subr.mxu0 %v432_v0  ;;  %301 = vmatprep.mubr.msk.f32.mxu0 %vm433_vm0, %v432_v0  ;;  %v29_v2 = vld [vmem:[%s521_s1] sm:$0x1]  ;;  %vm105_vm2 = vcmask 286720   ;;  %vm129_vm3 = vcmask 293888   ;;  %vm207_vm6 = vcmask 57344   ;;  %s434_s7 = smov [#allocation6]  }
  0x15   :  { %304 = vmatprep.subr.mxu1 %v432_v0  ;;  %306 = vmatprep.mubr.msk.f32.mxu1 %vm433_vm0, %v432_v0  ;;  %s266_s8 = sshll.u32 %s434_s7, 4  ;;  %s435_s9 = smov [#allocation5]   ;;  %s267_s8 = int_to_ptr.vmem [resolvable:$true] %s266_s8 }
  0x16   :  { %300 = vmatpush3.msra.mxu0 %v28_v1  ;;  %305 = vmatpush3.xpose.msk.msra.mxu1 %vm129_vm3, %v28_v1  ;;  %s256_s10 = sshll.u32 %s435_s9, 4  ;;  %s359_s11 = scalar_lea.vmem %s267_s8, 16  ;;  %s257_s10 = int_to_ptr.vmem [resolvable:$true] %s256_s10 }
  0x17   :  { %302 = vmatmul.mubr.msk.f32.vlgmr.msra.gmra.mrb[0].mxu0 %vm30_vm1, %v29_v2  ;;  %p360_p8 = scmp.ne.s32.totalorder %s267_s8, %s359_s11  ;;  %s363_s12 = scalar_lea.vmem %s267_s8, 32 }
  0x18   :  { %p364_p9 = scmp.lt.s32.totalorder %s267_s8, %s267_s8  ;;  %p365_p10 = scmp.lt.s32.totalorder %s363_s12, %s359_s11 }
  0x1a   :  { %p366_p11 = por %p365_p10, %p364_p9 }
  0x1c   :  { %p367_p12 = pnand %p366_p11, %p360_p8 }
  0xea   :  { %v100_v3 = vpop.f32.mrb[0].mxu0 }
  0xeb   :  { %v303_v4 = vpop.f32.mrb[1].mxu0  ;;  %v104_v5 = vmul.f32 %v100_v3, %v100_v3 }
  0xed   :  { %v106_v6 = vsel %vm105_vm2, %v104_v5, 0.0 }
  0xee   :  { %107 = vadd.xlane.f32.xlu0 %v106_v6 }
 0x17b   :  { %v108_v7 = vpop.xlane.xlu0 %107 }
 0x17c   :  { %v109_v8 = vrot.slane %v108_v7, 4 }
 0x17e   :  { %v110_v9 = vadd.f32 %v109_v8, %v108_v7 }
 0x180   :  { %v111_v10 = vrot.slane %v110_v9, 2 }
 0x182   :  { %v112_v11 = vadd.f32 %v111_v10, %v110_v9 }
 0x184   :  { %v113_v12 = vrot.slane %v112_v11, 1 }
 0x186   :  { %v114_v13 = vadd.f32 %v113_v12, %v112_v11 }
 0x188   :  { %309 = vpush %v114_v13 }
 0x1b9   :  { %s310_s0 = spop %309 }
 0x1ba   :  { %v116_v14 = vstv %s310_s0 }
 0x1bb   :  { %327 = vrsqrt.f32 %v116_v14  ;;  %vm119_vm4 = vcmp.eq.f32.partialorder %v116_v14, inf  ;;  %v122_v17 = vand.u32 2147483648, %v116_v14  ;;  %vm121_vm5 = vcmp.eq.f32.partialorder %v116_v14, 0.0 }
 0x1c5   :  { %v328_v15 = vpop.eup %327 }
 0x1c6   :  { %v118_v16 = vmul.f32 %v328_v15, %v116_v14 }
 0x1c8   :  { %v120_v18 = vsel %vm119_vm4, %v116_v14, %v118_v16 }
 0x1c9   :  { %v123_v19 = vsel %vm121_vm5, %v122_v17, %v120_v18 }
 0x1ca   :  { %311 = vpush %v123_v19 }
 0x1fb   :  { %s312_s1 = spop %311 }
 0x1fc   :  { %s125_s29 = sadd.f32 1e-12, %s312_s1 }
 0x1fe   :  { %v126_v20 = vstv %s125_s29 }
 0x1ff   :  { %329 = vrcp.f32 %v126_v20 }
 0x209   :  { %v330_v21 = vpop.eup %329 }
 0x20a   :  { %v128_v22 = vmul.f32 %v330_v21, %v100_v3 }
 0x20c   :  { %307 = vmatmul.mubr.msk.f32.vlgmr.msra.gmra.mrb[0].mxu1 %vm129_vm3, %v128_v22  ;;  %243 = vst.msk [vmem:[#allocation6] sm:$0x1] %vm105_vm2, %v128_v22 }
 0x2df   :  { %v202_v23 = vpop.f32.mrb[0].mxu1 }
 0x2e0   :  { %v308_v24 = vpop.f32.mrb[1].mxu1  ;;  %v206_v25 = vmul.f32 %v202_v23, %v202_v23 }
 0x2e2   :  { %v208_v26 = vsel %vm207_vm6, %v206_v25, 0.0 }
 0x2e3   :  { %209 = vadd.xlane.f32.xlu0 %v208_v26 }
 0x370   :  { %v210_v27 = vpop.xlane.xlu0 %209 }
 0x371   :  { %v211_v28 = vrot.slane %v210_v27, 4 }
 0x373   :  { %v212_v29 = vadd.f32 %v211_v28, %v210_v27 }
 0x375   :  { %v213_v30 = vrot.slane %v212_v29, 2 }
 0x377   :  { %v214_v31 = vadd.f32 %v213_v30, %v212_v29 }
 0x379   :  { %v215_v32 = vrot.slane %v214_v31, 1 }
 0x37b   :  { %v216_v33 = vadd.f32 %v215_v32, %v214_v31 }
 0x37d   :  { %313 = vpush %v216_v33 }
 0x3ae   :  { %s314_s30 = spop %313 }
 0x3af   :  { %v218_v34 = vstv %s314_s30 }
 0x3b0   :  { %331 = vrsqrt.f32 %v218_v34  ;;  %vm221_vm7 = vcmp.eq.f32.partialorder %v218_v34, inf  ;;  %v224_v37 = vand.u32 2147483648, %v218_v34  ;;  %vm223_vm8 = vcmp.eq.f32.partialorder %v218_v34, 0.0 }
 0x3ba   :  { %v332_v35 = vpop.eup %331 }
 0x3bb   :  { %v220_v36 = vmul.f32 %v332_v35, %v218_v34 }
 0x3bd   :  { %v222_v38 = vsel %vm221_vm7, %v218_v34, %v220_v36 }
 0x3be   :  { %v225_v39 = vsel %vm223_vm8, %v224_v37, %v222_v38 }
 0x3bf   :  { %315 = vpush %v225_v39 }
 0x3f0   :  { %s316_s5 = spop %315 }
 0x3f1   :  { %s227_s6 = sadd.f32 1e-12, %s316_s5 }
 0x3f3   :  { %v228_v40 = vstv %s227_s6 }
 0x3f4   :  { %333 = vrcp.f32 %v228_v40 }
 0x3fe   :  { %v334_v41 = vpop.eup %333 }
 0x3ff   :  { %v230_v42 = vmul.f32 %v334_v41, %v202_v23 }
 0x401   :  { %v231_v43 = vmul.f32 %v230_v42, %v202_v23  ;;  %242 = vst.msk [vmem:[#allocation5] sm:$0x1] %vm207_vm6, %v230_v42 }
 0x403   :  { %v232_v44 = vsel %vm207_vm6, %v231_v43, 0.0 }
 0x404   :  { %233 = vadd.xlane.f32.xlu1 %v232_v44 }
 0x405   :  { %370 = shalt.err (!%p367_p12)
}
 0x406   :  { %s371_s15 = scalar_lea.hbm %s523_s3, 16 }
 0x407   :  { %p372_p13 = scmp.ne.s32.totalorder %s523_s3, %s371_s15  ;;  %p375_p0 = scmp.lt.u32.totalorder %s371_s15, %s523_s3 }
 0x409   :  { %p377_p1 = pnand %p375_p0, %p372_p13 }
 0x40b   :  { %380 = shalt.err (!%p377_p1)
}
 0x40c   :  { %269 = dma.vmem_to_hbm [thread:$0]  %s267_s8, 16, %s523_s3, [#allocation7]  }
 0x40d   :  { %s381_s22 = scalar_lea.vmem %s257_s10, 16  ;;  %s385_s23 = scalar_lea.vmem %s257_s10, 32 }
 0x40e   :  { %p382_p2 = scmp.ne.s32.totalorder %s257_s10, %s381_s22  ;;  %p386_p3 = scmp.lt.s32.totalorder %s257_s10, %s257_s10 }
 0x40f   :  { %p387_p4 = scmp.lt.s32.totalorder %s385_s23, %s381_s22 }
 0x411   :  { %p388_p5 = por %p387_p4, %p386_p3 }
 0x413   :  { %p389_p6 = pnand %p388_p5, %p382_p2 }
 0x491   :  { %v234_v45 = vpop.xlane.xlu1 %233 }
 0x492   :  { %392 = shalt.err (!%p389_p6)
}
 0x493   :  { %s393_s26 = scalar_lea.hbm %s522_s2, 16 }
 0x494   :  { %p394_p7 = scmp.ne.s32.totalorder %s522_s2, %s393_s26  ;;  %p397_p8 = scmp.lt.u32.totalorder %s393_s26, %s522_s2 }
 0x496   :  { %p399_p9 = pnand %p397_p8, %p394_p7 }
 0x498   :  { %402 = shalt.err (!%p399_p9)
}
 0x499   :  { %259 = dma.vmem_to_hbm [thread:$0]  %s257_s10, 16, %s522_s2, [#allocation4]   ;;  %v235_v46 = vrot.slane %v234_v45, 4  ;;  %vm248_vm9 = vcmask 0  }
 0x49a   :  { %s436_s5 = smov [#allocation8]  }
 0x49b   :  { %v236_v47 = vadd.f32 %v235_v46, %v234_v45  ;;  %s276_s6 = sshll.u32 %s436_s5, 4  ;;  %s277_s6 = int_to_ptr.vmem [resolvable:$true] %s276_s6 }
 0x49c   :  { %s403_s2 = scalar_lea.vmem %s277_s6, 16  ;;  %s407_s8 = scalar_lea.vmem %s277_s6, 32 }
 0x49d   :  { %v237_v48 = vrot.slane %v236_v47, 2  ;;  %p404_p10 = scmp.ne.s32.totalorder %s277_s6, %s403_s2  ;;  %p408_p11 = scmp.lt.s32.totalorder %s277_s6, %s277_s6 }
 0x49e   :  { %p409_p12 = scmp.lt.s32.totalorder %s407_s8, %s403_s2 }
 0x49f   :  { %v238_v49 = vadd.f32 %v237_v48, %v236_v47 }
 0x4a0   :  { %p410_p13 = por %p409_p12, %p408_p11 }
 0x4a1   :  { %v239_v50 = vrot.slane %v238_v49, 1 }
 0x4a2   :  { %p411_p0 = pnand %p410_p13, %p404_p10 }
 0x4a3   :  { %v240_v51 = vadd.f32 %v239_v50, %v238_v49 }
 0x4a5   :  { %317 = vpush %v240_v51 }
 0x4d6   :  { %s318_s30 = spop %317 }
 0x4d7   :  { %v244_v52 = vstv %s318_s30 }
 0x4d8   :  { %335 = vrcp.f32 %v244_v52 }
 0x4e2   :  { %v336_v53 = vpop.eup %335 }
 0x4e3   :  { %319 = vpush %v336_v53 }
 0x514   :  { %s320_s7 = spop %319 }
 0x515   :  { %v247_v54 = vstv %s320_s7 }
 0x516   :  { %249 = vst.msk [vmem:[#allocation8] sm:$0x1] %vm248_vm9, %v247_v54 }
 0x517   :  { %414 = shalt.err (!%p411_p0)
}
 0x518   :  { %s415_s11 = scalar_lea.hbm %s524_s4, 16 }
 0x519   :  { %p416_p1 = scmp.ne.s32.totalorder %s524_s4, %s415_s11  ;;  %p419_p2 = scmp.lt.u32.totalorder %s415_s11, %s524_s4 }
 0x51b   :  { %p421_p3 = pnand %p419_p2, %p416_p1 }
 0x51d   :  { %424 = shalt.err (!%p421_p3)
}
 0x51e   :  { %279 = dma.vmem_to_hbm [thread:$0]  %s277_s6, 16, %s524_s4, [#allocation7]  }
 0x51f   :  { %427 = dma.done.wait [#allocation4], 16  }
 0x520   :  { %428 = vsyncadd [#allocation4], 4294967280 }
 0x521   :  { %429 = dma.done.wait [#allocation7], 32  }
 0x522   :  { %430 = vsyncadd [#allocation7], 4294967264 }
 0x523   :  { %289 = vsyncpa [#allocation3], 1 }
 0x524   :  { %290 = vsyncpa [#allocation4], 1 }
 0x525   :  { %291 = vsyncpa [#allocation7], 1 }

</bundles_post_ra>
